<compile_context>
chip_gen: v7x
topology: tpu7x:2x2x1
jax: 0.10.0
libtpu: 0.0.40
codegen_flags: <defaults>
</compile_context>

<pallas_src>
import numpy as np
import jax
import jax.numpy as jnp
from jax.experimental import pallas as pl
from jax.experimental.pallas import tpu as pltpu

_LOG_2PI = float(np.log(2.0 * np.pi))


def _gaussian_v2_kernel(x_ref, mask_ref, mu_ref, prec_ref, lsv_ref, out_ref):
    x = x_ref[...].astype(jnp.float32)                # (TM, D) native dtype -> f32
    m = mask_ref[...].astype(jnp.float32)             # (TM, D) int8 0/1 -> f32
    mu = mu_ref[...]                                  # (1, D) f32
    lsv = lsv_ref[...]                                # (1, D) f32: log|1/sv+1e-8| + log(2*pi)

    xs = (x - mu) * m                                 # (TM, D) f32
    # Batched quadratic form xs^T P xs: bf16 operands, f32 accumulation (MXU).
    t = jnp.dot(xs.astype(jnp.bfloat16), prec_ref[...],
                preferred_element_type=jnp.float32)   # (TM, D) f32
    # Single fused cross-lane reduction: quad + masked logdet + count*log(2*pi).
    fused = t * xs + lsv * m                          # (TM, D) f32
    # keepdims (TM, 1) store: tiny output, avoids a sublane->lane relayout.
    out_ref[...] = jnp.float32(0.5) * jnp.sum(fused, axis=-1, keepdims=True)


def _pick_tile_m(batch, d_pad, x_bytes):
    """Pick TM from DMA amortization + multi-step-grid constraints only.

    Per-grid-step overhead is ~0.35 us, so target >= ~2 MiB of streamed x+mask
    bytes per step.  MXU fill is irrelevant here (the (TM,128)x(128,128)
    matmul is far below DMA time on every generation), so we do NOT size for
    the MXU.  Keep the 'parallel' batch grid >= 2 steps (>= 4 when the batch
    allows it) so v7x's two TensorCores both get work; for small batches
    shrink TM rather than running a 1-step grid.
    """
    row_bytes = d_pad * (x_bytes + 1)                 # x + int8 mask per batch row
    tm = (2 << 20) // max(row_bytes, 1)               # ~2 MiB streamed per step
    tm = max(8, min(int(tm), 4096))
    target_steps = 4 if batch >= 32 else 2
    tm = min(tm, pl.cdiv(batch, target_steps))
    tm = max(8, ((int(tm) + 7) // 8) * 8)             # sublane multiple
    return tm


def gaussian_v2_forward(x, mask, mu, log_diagonal, lower_tri):
    """Replicates GaussianV2.forward(x, mask) with cov=None (learned params)."""
    B = x.shape[0]
    D = int(np.prod(x.shape[1:]))

    # --- inputs: no batch padding, no wrapper-side HBM passes over x ---------
    x_flat = x.reshape(B, D)
    if x_flat.dtype not in (jnp.float32, jnp.bfloat16):
        x_flat = x_flat.astype(jnp.float32)
    mask_flat = mask.reshape(B, D)
    if mask_flat.dtype != jnp.int8:
        # bool -> int8 is a 1 B/elem pass (negligible next to the x stream).
        mask_flat = mask_flat.astype(jnp.int8)

    # --- parameter glue (plain JAX) ------------------------------------------
    # aux[r, c] = lower_tri[r*(r-1)/2 + c] for r > c (row-major, matching
    # torch.tril_indices ordering) + exp(log_diagonal) on the diagonal.
    rows = np.arange(D)[:, None]
    cols = np.arange(D)[None, :]
    low_np = rows > cols
    gidx_np = np.where(low_np, rows * (rows - 1) // 2 + cols, 0).astype(np.int32)
    aux = jnp.where(jnp.asarray(low_np),
                    jnp.take(lower_tri.astype(jnp.float32), jnp.asarray(gidx_np)),
                    jnp.float32(0.0))
    aux = aux + jnp.diag(jnp.exp(log_diagonal.astype(jnp.float32)))
    precision = aux.T @ aux                                            # (D, D) f32, PSD

    # TODO(synk): torch.linalg.svdvals has no Pallas equivalent; precision is
    # symmetric PSD so its singular values == its eigenvalues (descending).
    sv_inv = jnp.linalg.eigvalsh(precision)[::-1]                      # (D,), descending
    sv = 1.0 / sv_inv + 1e-8
    # Fold the per-element log(2*pi) "count" term into the log-sv vector so the
    # kernel performs a single masked reduction.
    lsv_plus = (jnp.log(jnp.abs(sv)) + jnp.float32(_LOG_2PI)).reshape(1, D).astype(jnp.float32)
    mu2 = mu.reshape(1, D).astype(jnp.float32)

    # --- feature padding ONLY when D % 128 != 0 (correctness of the lane
    #     reduction / matmul); x/mask are otherwise streamed as-is. ------------
    D_pad = 128 * pl.cdiv(D, 128)
    if D_pad != D:
        x_flat = jnp.pad(x_flat, ((0, 0), (0, D_pad - D)))
        mask_flat = jnp.pad(mask_flat, ((0, 0), (0, D_pad - D)))
        mu2 = jnp.pad(mu2, ((0, 0), (0, D_pad - D)))
        lsv_plus = jnp.pad(lsv_plus, ((0, 0), (0, D_pad - D)))
        precision = jnp.pad(precision, ((0, D_pad - D), (0, D_pad - D)))
    prec_bf16 = precision.astype(jnp.bfloat16)    # MXU-native operand, half the DMA bytes

    x_bytes = x_flat.dtype.itemsize
    TM = _pick_tile_m(B, D_pad, x_bytes)
    grid = (pl.cdiv(B, TM),)                      # ragged last block: rows >= B discarded

    # Precision is grid-invariant; at large D single-buffer it so the v7x
    # 64 MiB VMEM budget isn't blown by a useless second copy.
    if D_pad >= 1024:
        prec_bufs = 1
        prec_spec = pl.BlockSpec((D_pad, D_pad), lambda i: (0, 0),
                                 pipeline_mode=pl.Buffered(1))
    else:
        prec_bufs = 2
        prec_spec = pl.BlockSpec((D_pad, D_pad), lambda i: (0, 0))

    # Explicit VMEM budget (v5e scoped default is only 16 MiB); capped at
    # 64 MiB so the same choice is valid on v7x's smaller physical VMEM.
    vmem_bytes = (2 * TM * D_pad * (x_bytes + 1)      # double-buffered x + mask tiles
                  + prec_bufs * D_pad * D_pad * 2     # precision (bf16)
                  + 2 * 2 * D_pad * 4                 # mu + lsv (f32, double buffered)
                  + 2 * TM * 4)                       # output tile
    vmem_limit = int(min(64 << 20, max(32 << 20, 2 * vmem_bytes)))

    cost = pl.CostEstimate(
        flops=2 * B * D_pad * D_pad + 5 * B * D_pad,
        transcendentals=0,
        bytes_accessed=B * D_pad * (x_bytes + 1) + 2 * D_pad * D_pad + 4 * B,
    )

    out = pl.pallas_call(
        _gaussian_v2_kernel,
        out_shape=jax.ShapeDtypeStruct((B, 1), jnp.float32),
        grid=grid,
        in_specs=[
            pl.BlockSpec((TM, D_pad), lambda i: (i, 0)),      # x tile (pipelined)
            pl.BlockSpec((TM, D_pad), lambda i: (i, 0)),      # mask tile (int8, pipelined)
            pl.BlockSpec((1, D_pad), lambda i: (0, 0)),       # mu (grid-invariant)
            prec_spec,                                        # precision (grid-invariant)
            pl.BlockSpec((1, D_pad), lambda i: (0, 0)),       # log-sv + log(2*pi)
        ],
        out_specs=pl.BlockSpec((TM, 1), lambda i: (i, 0)),    # (B, 1) keepdims output
        compiler_params=pltpu.CompilerParams(
            dimension_semantics=("parallel",),                # megacore / 2-TC sharding
            vmem_limit_bytes=vmem_limit,
        ),
        cost_estimate=cost,
    )(x_flat, mask_flat, mu2, prec_bf16, lsv_plus)

    return out[:, 0], None   # matches PyTorch's (log_p, None), log_p shape (B,)


def _reference_forward(x, mask, mu, log_diagonal, lower_tri):
    """Pure-JAX reference mirroring the PyTorch code, for a sanity check."""
    B = x.shape[0]
    D = int(np.prod(x.shape[1:]))
    tr, tc = jnp.tril_indices(D, k=-1)
    aux = jnp.zeros((D, D), jnp.float32).at[tr, tc].set(lower_tri)
    aux = aux + jnp.diag(jnp.exp(log_diagonal))
    P = aux.T @ aux
    sv_inv = jnp.linalg.svd(P, compute_uv=False)
    sv = 1.0 / sv_inv + 1e-8
    m = mask.reshape(B, D).astype(jnp.float32)
    xs = (x.reshape(B, D).astype(jnp.float32) - mu[None, :]) * m
    quad = jnp.einsum('bi,ij,bj->b', xs, P, xs,
                      precision=jax.lax.Precision.HIGHEST)
    log_p = quad + jnp.sum(jnp.log(jnp.abs(sv))[None, :] * m, axis=1)
    log_p = log_p + jnp.sum(m, axis=1) * jnp.float32(_LOG_2PI)
    return log_p / 2.0


if __name__ == "__main__":
    # NCHW input: B=200 (exercises the multi-step grid + ragged last block),
    # C=2, H=8, W=8 -> flattened feature dim D = 128.
    B, C, H, W = 200, 2, 8, 8
    D = C * H * W

    key = jax.random.PRNGKey(0)
    k_x, k_mask, k_mu, k_logd, k_tril = jax.random.split(key, 5)

    x = jax.random.normal(k_x, (B, C, H, W), dtype=jnp.float32)
    # Boolean mask with some missing entries (exercises the masking path).
    mask = jax.random.bernoulli(k_mask, p=0.7, shape=(B, C, H, W))

    # Deterministic parameter init (module __init__ uses standard normal draws).
    mu = jax.random.normal(k_mu, (D,), dtype=jnp.float32)
    log_diagonal = jax.random.normal(k_logd, (D,), dtype=jnp.float32)
    n_tril = (D * (D - 1)) // 2
    lower_tri = jax.random.normal(k_tril, (n_tril,), dtype=jnp.float32)

    log_p, _ = gaussian_v2_forward(x, mask, mu, log_diagonal, lower_tri)
    log_p = jax.block_until_ready(log_p)

    ref = jax.block_until_ready(_reference_forward(x, mask, mu, log_diagonal, lower_tri))
    # bf16 MXU operands + eigvalsh-vs-svdvals differences at the f32 noise floor
    # => compare at ~1-2% relative tolerance (result magnitudes are O(1e3-1e4)).
    np.testing.assert_allclose(np.asarray(log_p), np.asarray(ref), rtol=2e-2, atol=1e-2)

    print("KERNEL_OK")
</pallas_src>

<mosaic_0001>
module attributes {stable_mosaic.version = 11 : i64} {
  func.func @_gaussian_v2_kernel(%arg0: i32, %arg1: memref<56x128xf32, #tpu.memory_space<vmem>>, %arg2: memref<56x128xi8, #tpu.memory_space<vmem>>, %arg3: memref<1x128xf32, #tpu.memory_space<vmem>>, %arg4: memref<128x128xbf16, #tpu.memory_space<vmem>>, %arg5: memref<1x128xf32, #tpu.memory_space<vmem>>, %arg6: memref<56x1xf32, #tpu.memory_space<vmem>>) attributes {dimension_semantics = [#tpu.dimension_semantics<parallel>], iteration_bounds = array<i64: 4>, scalar_prefetch = 0 : i64, scratch_operands = 0 : i64, tpu.core_type = #tpu.core_type<tc>, window_params = [{transform_indices = @transform_0, window_bounds = array<i64: 56, 128>}, {transform_indices = @transform_1, window_bounds = array<i64: 56, 128>}, {pipeline_mode = #tpu.pipeline_mode<synchronous>, transform_indices = @transform_2, window_bounds = array<i64: 1, 128>}, {pipeline_mode = #tpu.pipeline_mode<synchronous>, transform_indices = @transform_3, window_bounds = array<i64: 128, 128>}, {pipeline_mode = #tpu.pipeline_mode<synchronous>, transform_indices = @transform_4, window_bounds = array<i64: 1, 128>}, {transform_indices = @transform_5, window_bounds = array<i64: 56, 1>}]} {
    %c0 = arith.constant 0 : index
    %c0_0 = arith.constant 0 : index
    %0 = vector.load %arg1[%c0, %c0_0] : memref<56x128xf32, #tpu.memory_space<vmem>>, vector<56x128xf32>
    %c0_1 = arith.constant 0 : index
    %c0_2 = arith.constant 0 : index
    %1 = vector.load %arg2[%c0_1, %c0_2] : memref<56x128xi8, #tpu.memory_space<vmem>>, vector<56x128xi8>
    %2 = arith.sitofp %1 : vector<56x128xi8> to vector<56x128xf32>
    %c0_3 = arith.constant 0 : index
    %c0_4 = arith.constant 0 : index
    %3 = vector.load %arg3[%c0_3, %c0_4] : memref<1x128xf32, #tpu.memory_space<vmem>>, vector<1x128xf32>
    %c0_5 = arith.constant 0 : index
    %c0_6 = arith.constant 0 : index
    %4 = vector.load %arg5[%c0_5, %c0_6] : memref<1x128xf32, #tpu.memory_space<vmem>>, vector<1x128xf32>
    %5 = vector.broadcast %3 : vector<1x128xf32> to vector<56x128xf32>
    %6 = arith.subf %0, %5 : vector<56x128xf32>
    %7 = arith.mulf %6, %2 : vector<56x128xf32>
    %8 = arith.truncf %7 : vector<56x128xf32> to vector<56x128xbf16>
    %c0_7 = arith.constant 0 : index
    %c0_8 = arith.constant 0 : index
    %9 = vector.load %arg4[%c0_7, %c0_8] : memref<128x128xbf16, #tpu.memory_space<vmem>>, vector<128x128xbf16>
    %cst = arith.constant dense<0.000000e+00> : vector<56x128xf32>
    %10 = tpu.matmul %8, %9, %cst {dimension_numbers = #tpu.dot_dimension_numbers<[1], [0], [0], [1], [0, 0, 1, 1], [], []>} : vector<56x128xbf16>, vector<128x128xbf16>, vector<56x128xf32> -> vector<56x128xf32>
    %11 = arith.mulf %10, %7 : vector<56x128xf32>
    %12 = vector.broadcast %4 : vector<1x128xf32> to vector<56x128xf32>
    %13 = arith.mulf %12, %2 : vector<56x128xf32>
    %14 = arith.addf %11, %13 : vector<56x128xf32>
    %cst_9 = arith.constant dense<0.000000e+00> : vector<56xf32>
    %15 = vector.multi_reduction <add>, %14, %cst_9 [1] : vector<56x128xf32> to vector<56xf32>
    %16 = vector.shape_cast %15 : vector<56xf32> to vector<56x1xf32>
    %cst_10 = arith.constant 5.000000e-01 : f32
    %17 = vector.broadcast %cst_10 : f32 to vector<56x1xf32>
    %18 = arith.mulf %17, %16 : vector<56x1xf32>
    %c0_11 = arith.constant 0 : index
    %c0_12 = arith.constant 0 : index
    %19 = vector.load %arg6[%c0_11, %c0_12] : memref<56x1xf32, #tpu.memory_space<vmem>>, vector<56x1xf32>
    tpu.vector_store %arg6[%c0_11, %c0_12], %18 {strides = array<i32>} : memref<56x1xf32, #tpu.memory_space<vmem>>, vector<56x1xf32>,
    return
  }
  func.func @transform_0(%arg0: i32) -> (i32, i32) {
    %c0_i32 = arith.constant 0 : i32
    %c0_i32_0 = arith.constant 0 : i32
    return %arg0, %c0_i32 : i32, i32
  }
  func.func @transform_1(%arg0: i32) -> (i32, i32) {
    %c0_i32 = arith.constant 0 : i32
    %c0_i32_0 = arith.constant 0 : i32
    return %arg0, %c0_i32 : i32, i32
  }
  func.func @transform_2(%arg0: i32) -> (i32, i32) {
    %c0_i32 = arith.constant 0 : i32
    %c0_i32_0 = arith.constant 0 : i32
    %c0_i32_1 = arith.constant 0 : i32
    return %c0_i32, %c0_i32_0 : i32, i32
  }
  func.func @transform_3(%arg0: i32) -> (i32, i32) {
    %c0_i32 = arith.constant 0 : i32
    %c0_i32_0 = arith.constant 0 : i32
    %c0_i32_1 = arith.constant 0 : i32
    return %c0_i32, %c0_i32_0 : i32, i32
  }
  func.func @transform_4(%arg0: i32) -> (i32, i32) {
    %c0_i32 = arith.constant 0 : i32
    %c0_i32_0 = arith.constant 0 : i32
    %c0_i32_1 = arith.constant 0 : i32
    return %c0_i32, %c0_i32_0 : i32, i32
  }
  func.func @transform_5(%arg0: i32) -> (i32, i32) {
    %c0_i32 = arith.constant 0 : i32
    %c0_i32_0 = arith.constant 0 : i32
    return %arg0, %c0_i32 : i32, i32
  }
}

</mosaic_0001>

<bundles_post_ra>
// kernel: tpu_custom_call.1
= control target key start
LH: loop header
LB: loop body
LE: loop exit
PB: predicated region body
PF: predicated region fallthrough
CT: control target
= control target key end

     0   :  { %10 = vsyncpa [#allocation3], 0  ;;  %s1619_s0 = inlined_call_operand.hbm [shape: f32[200,128], index: 0, kind: input, shape index: {}]   ;;  %s1620_s1 = inlined_call_operand.hbm [shape: s8[200,128], index: 1, kind: input, shape index: {}]   ;;  %s1621_s2 = inlined_call_operand.vmem [shape: f32[1,128], index: 2, kind: input, shape index: {}]   ;;  %s1622_s3 = inlined_call_operand.hbm [shape: bf16[128,128], index: 3, kind: input, shape index: {}]   ;;  %s1623_s4 = inlined_call_operand.vmem [shape: f32[1,128], index: 4, kind: input, shape index: {}]   ;;  %s1624_s5 = inlined_call_operand.vmem [shape: f32[200,1], index: 5, kind: output, shape index: {}]  }
   0x1   :  { %12 = vsyncpa [#allocation3 + $0x1], 0 }
   0x2   :  { %13 = vsyncpa [#allocation5], 0 }
   0x3   :  { %15 = vsyncpa [#allocation5 + $0x1], 0  ;;  %s1313_s18 = smov 0   ;;  %s1315_s19 = smov 0  }
   0x4   :  { %s1317_s20 = smov 0   ;;  %s1319_s21 = smov 0  }
   0x5 LB: > { %s1332_s22 = sadd.s32 4294967295, %s1240_s21   ;;  %s1335_s23 = sadd.s32 1, %s1240_s21   ;;  %s1240_s21 = sphi %s1319_s21, %s1646_s21   ;;  %s1236_s20 = sphi %s1317_s20, %s1645_s20   ;;  %s1232_s19 = sphi %s1315_s19, %s1644_s19   ;;  %s1228_s18 = sphi %s1313_s18, %s1643_s18  }
   0x6   : > { %s25_s24 = ssub.s32 %s1240_s21, %s1335_s23  ;;  %s28_s25 = sadd.s32 1, %s1236_s20 }
   0x7   : > { %p26_p0 = scmp.eq.s32.totalorder %s25_s24, 0  ;;  %p35_p1 = scmp.ne.s32.totalorder %s1236_s20, %s1232_s19 }
   0x8   : > { %p36_p2 = scmp.eq.s32.totalorder %s1240_s21, 0  ;;  %p41_p3 = scmp.ne.s32.totalorder %s1232_s19, %s1228_s18 }
   0x9   : > { %s1345_s26 = scalar_select %p26_p0, %s1236_s20, %s28_s25  }
   0xa   : > { %p1347_p4 = por %p36_p2, %p35_p1  ;;  %p1625_p5 = scmp.eq.s32.totalorder %s1332_s22, 0 }
   0xb   : > { %p154_p6 = scmp.eq.s32.totalorder %s1332_s22, 3  ;;  %p844_p7 = scmp.ge.s32.totalorder %s1240_s21, 1 }
   0xc   : > { %s1628_s27 = scalar_select %p1347_p4, 1, 0 }
   0xd   : > { %p1356_p8 = por %p1625_p5, %p41_p3  ;;  %p167_p9 = scmp.lt.s32.totalorder %s1240_s21, 5 }
   0xe   : > { %p1361_p10 = por %p154_p6, %p35_p1  ;;  %s1274_s6 = smov [#allocation6]  }
   0xf   : > { %s1629_s28 = scalar_select %p1356_p8, 1, 0 }
  0x10   : > { %s1630_s29 = scalar_select %p1361_p10, 1, 0 }
  0x11   : > { %p1365_p11 = pnand %p844_p7, %p167_p9  ;;  %s182_s7 = sshll.u32 %s1274_s6, 4  ;;  %s183_s7 = int_to_ptr.vmem [resolvable:$true] %s182_s7 }
  0x12   : > { %s1082_s11 = scalar_lea.hbm %s1622_s3, 1024 }
  0x13   : > { %s1631_s30 = scalar_select %p1365_p11, 1, 0 }
  0x14   : > { %p960_p12 = pneg %p1365_p11  ;;  %p1083_p0 = scmp.ne.s32.totalorder %s1622_s3, %s1082_s11 }
  0x15   : > { %p1089_p6 = scmp.lt.u32.totalorder %s1082_s11, %s1622_s3 }
  0x16   : > { %p1373_p13 = pnand %p960_p12, %p1625_p5 }
  0x18   : > { %p1084_p1 = pneg %p1373_p13 }
  0x1a   : > { %p1085_p2 = pnand %p1084_p1, %p1083_p0 }
  0x1c   : > { %p1086_p3 = pneg %p1085_p2 }
  0x1e   : > { %p1091_p7 = pnand %p1089_p6, %p1086_p3 }
  0x20   : > { %1094 = shalt.err (!%p1091_p7)
}
  0x21   : > { %s1095_s16 = scalar_lea.vmem %s183_s7, 1024  ;;  %p1103_p10 = scmp.lt.s32.totalorder %s183_s7, %s183_s7 }
  0x22   : > { %p1096_p9 = scmp.ne.s32.totalorder %s183_s7, %s1095_s16  ;;  %p1104_p8 = scmp.lt.s32.totalorder %s1095_s16, %s1095_s16 }
  0x24   : > { %p1098_p12 = pnand %p1096_p9, %p1084_p1  ;;  %p1105_p11 = por %p1104_p8, %p1103_p10 }
  0x26   : > { %p1099_p5 = pneg %p1098_p12 }
  0x28   : > { %p1106_p4 = pnand %p1105_p11, %p1099_p5 }
  0x2a   : > { %1109 = shalt.err (!%p1106_p4)
}
  0x2b   : > { %s1275_s17 = smov 64   ;;  %s1276_s18 = smov 4  }
  0x2c   : > { %963 = dma.hbm_to_vmem [thread:$0]  (!%p1373_p13), %s1622_s3, 1024, %s183_s7, [#allocation5], %s1275_s17, %s1275_s17, %s1276_s18  }
  0x2d   : > { %p846_p0 = scmp.ge.s32.totalorder %s1240_s21, 4 }
  0x2e   : > { %p1633_p2 = scmp.ne.s32.totalorder (!%p846_p0), %s1628_s27, 0 }
  0x2f   : > { %195 = sbr.rel (%p846_p0) target bundleno = 126 (0x7e), region = 28 }
  0x36   : > { %198 = sbr.rel (!%p1633_p2) target bundleno = 89 (0x59), region = 32  ;;  %s199_s6 = sand.u32 (%p1633_p2), 1, %s1236_s20  }
  0x37   : > { %s204_s9 = smul.u32 (%p1633_p2), 7, %s1240_s21  ;;  %s1401_s13 = scalar_lea.sflag (%p1633_p2), [#allocation3], %s199_s6 }
  0x38   : > { %s950_s10 = smul.u32 (%p1633_p2), 56, %s199_s6 }
  0x39   : > { %s205_s11 = ssub.s32 (%p1633_p2), 25, %s204_s9 }
  0x3a   : > { %p206_p4 = scmp.lt.s32.totalorder (%p1633_p2), %s205_s11, 7  ;;  %s203_s7 = scalar_lea.vmem (%p1633_p2), [#allocation2], %s950_s10 }
  0x3d   : > { %s1648_s11 = smov (!%p206_p4, %s205_s11), 7 }
  0x3e   : > { %s1398_s12 = sshll.u32 %s1648_s11, 7 }
  0x3f   : > { %s210_s8 = ssub.s32 896, %s1398_s12 }
  0x40   : > { %211 = vsyncadd %s1401_s13, %s210_s8  ;;  %p848_p5 = scmp.ne.s32.totalorder %s1398_s12, 0  ;;  %s881_s14 = smul.u32 896, %s1240_s21 }
  0x41   : > { %s216_s15 = sshll.u32 %s203_s7, 4  ;;  %s1114_s9 = scalar_lea.hbm %s1619_s0, 3200  ;;  %s1411_s15 = int_to_ptr.vmem [resolvable:$true] %s216_s15 }
  0x42   : > { %s1409_s18 = scalar_lea.hbm %s1619_s0, %s881_s14 }
  0x43   : > { %s1110_s24 = scalar_lea.hbm %s1409_s18, %s1398_s12  ;;  %p1115_p13 = scmp.lt.u32.totalorder %s1409_s18, %s1619_s0 }
  0x44   : > { %p1111_p8 = scmp.ne.s32.totalorder %s1409_s18, %s1110_s24  ;;  %p1116_p1 = scmp.lt.u32.totalorder %s1114_s9, %s1110_s24 }
  0x45   : > { %p1118_p6 = scmp.lt.u32.totalorder %s1110_s24, %s1409_s18 }
  0x46   : > { %p1112_p10 = pnand %p1111_p8, %p848_p5  ;;  %p1117_p3 = por %p1116_p1, %p1115_p13 }
  0x48   : > { %p1113_p11 = pneg %p1112_p10  ;;  %p1119_p7 = por %p1118_p6, %p1117_p3 }
  0x4a   : > { %p1120_p9 = pnand %p1119_p7, %p1113_p11 }
  0x4c   : > { %1123 = shalt.err (!%p1120_p9)
}
  0x4d   : > { %s1124_s8 = scalar_lea.vmem %s1411_s15, %s1398_s12  ;;  %s1277_s7 = smov [#allocation2]  }
  0x4e   : > { %p1125_p12 = scmp.ne.s32.totalorder %s1411_s15, %s1124_s8  ;;  %s1128_s14 = sshll.u32 %s1277_s7, 4  ;;  %s1129_s14 = int_to_ptr.vmem [resolvable:$false] %s1128_s14 }
  0x4f   : > { %s1130_s16 = scalar_lea.vmem %s1129_s14, 1792  ;;  %p1131_p4 = scmp.lt.s32.totalorder %s1411_s15, %s1129_s14 }
  0x50   : > { %p1126_p0 = pnand %p1125_p12, %p848_p5  ;;  %p1132_p8 = scmp.lt.s32.totalorder %s1130_s16, %s1124_s8 }
  0x52   : > { %p1127_p2 = pneg %p1126_p0  ;;  %p1133_p10 = por %p1132_p8, %p1131_p4 }
  0x54   : > { %p1134_p13 = pnand %p1133_p10, %p1127_p2 }
  0x56   : > { %1137 = shalt.err (!%p1134_p13)
}
  0x57   : > { %s1278_s17 = smov 128   ;;  %s1279_s24 = smov 8  }
  0x58   : > { %222 = dma.hbm_to_vmem [thread:$0]  (%p848_p5), %s1409_s18, %s1398_s12, %s1411_s15, %s1401_s13, %s1278_s17, %s1278_s17, %s1279_s24  }
  0x59 PF: > { %p1634_p11 = scmp.ne.s32.totalorder %s1628_s27, 0 }
  0x5a   : > { %s226_s25 = sand.u32 (%p1634_p11), 1, %s1240_s21   ;;  %s228_s6 = sand.u32 (%p1634_p11), 1, %s1236_s20  }
  0x5b   : > { %225 = sbr.rel (!%p1634_p11) target bundleno = 126 (0x7e), region = 36  ;;  %s1446_s14 = scalar_lea.sflag (%p1634_p11), [#allocation5], %s226_s25 }
  0x5c   : > { %s951_s9 = smul.u32 (%p1634_p11), 14, %s228_s6 }
  0x5d   : > { %s231_s10 = smul.u32 (%p1634_p11), 7, %s1240_s21 }
  0x5e   : > { %s230_s12 = scalar_lea.vmem (%p1634_p11), [#allocation4], %s951_s9 }
  0x5f   : > { %s232_s11 = ssub.s32 (%p1634_p11), 25, %s231_s10 }
  0x60   : > { %p233_p1 = scmp.lt.s32.totalorder (%p1634_p11), %s232_s11, 7 }
  0x62   : > { %s1650_s11 = smov (!%p233_p1, %s232_s11), 7 }
  0x63   : > { %s1443_s8 = sshll.u32 %s1650_s11, 5 }
  0x64   : > { %s237_s7 = ssub.s32 224, %s1443_s8 }
  0x65   : > { %238 = vsyncadd %s1446_s14, %s237_s7  ;;  %p853_p5 = scmp.ne.s32.totalorder %s1443_s8, 0  ;;  %s882_s27 = smul.u32 224, %s1240_s21 }
  0x66   : > { %s243_s13 = sshll.u32 %s230_s12, 4  ;;  %s1142_s21 = scalar_lea.hbm %s1620_s1, 800  ;;  %s1456_s13 = int_to_ptr.vmem [resolvable:$true] %s243_s13 }
  0x67   : > { %s1454_s16 = scalar_lea.hbm %s1620_s1, %s882_s27 }
  0x68   : > { %s1138_s17 = scalar_lea.hbm %s1454_s16, %s1443_s8  ;;  %p1143_p9 = scmp.lt.u32.totalorder %s1454_s16, %s1620_s1 }
  0x69   : > { %p1139_p3 = scmp.ne.s32.totalorder %s1454_s16, %s1138_s17  ;;  %p1144_p12 = scmp.lt.u32.totalorder %s1142_s21, %s1138_s17 }
  0x6a   : > { %p1146_p2 = scmp.lt.u32.totalorder %s1138_s17, %s1454_s16 }
  0x6b   : > { %p1140_p6 = pnand %p1139_p3, %p853_p5  ;;  %p1145_p0 = por %p1144_p12, %p1143_p9 }
  0x6d   : > { %p1141_p7 = pneg %p1140_p6  ;;  %p1147_p4 = por %p1146_p2, %p1145_p0 }
  0x6f   : > { %p1148_p8 = pnand %p1147_p4, %p1141_p7 }
  0x71   : > { %1151 = shalt.err (!%p1148_p8)
}
  0x72   : > { %s1152_s10 = scalar_lea.vmem %s1456_s13, %s1443_s8  ;;  %s1280_s11 = smov [#allocation4]  }
  0x73   : > { %p1153_p10 = scmp.ne.s32.totalorder %s1456_s13, %s1152_s10  ;;  %s1156_s7 = sshll.u32 %s1280_s11, 4  ;;  %s1157_s7 = int_to_ptr.vmem [resolvable:$false] %s1156_s7 }
  0x74   : > { %s1158_s12 = scalar_lea.vmem %s1157_s7, 448  ;;  %p1159_p1 = scmp.lt.s32.totalorder %s1456_s13, %s1157_s7 }
  0x75   : > { %p1154_p13 = pnand %p1153_p10, %p853_p5  ;;  %p1160_p3 = scmp.lt.s32.totalorder %s1158_s12, %s1152_s10 }
  0x77   : > { %p1155_p11 = pneg %p1154_p13  ;;  %p1161_p6 = por %p1160_p3, %p1159_p1 }
  0x79   : > { %p1162_p9 = pnand %p1161_p6, %p1155_p11 }
  0x7b   : > { %1165 = shalt.err (!%p1162_p9)
}
  0x7c   : > { %s1281_s27 = smov 32   ;;  %s1282_s15 = smov 2  }
  0x7d   : > { %249 = dma.hbm_to_vmem [thread:$0]  (%p853_p5), %s1454_s16, %s1443_s8, %s1456_s13, %s1446_s14, %s1281_s27, %s1281_s27, %s1282_s15  }
  0x7e PF: > { %p1635_p7 = scmp.ne.s32.totalorder %s1631_s30, 0 }
  0x7f   : > { %s1486_s18 = sand.u32 (!%p1635_p7), 1, %s1232_s19   ;;  %p1636_p12 = scmp.ne.s32.totalorder (!%p1635_p7), %s1629_s28, 0 }
  0x80   : > { %255 = sbr.rel (%p1635_p7) target bundleno = 611 (0x263), region = 40  ;;  %s258_s24 = scalar_lea.sflag (!%p1635_p7), [#allocation3], %s1486_s18 }
  0x81   : > { %s952_s17 = smul.u32 (!%p1635_p7), 56, %s1486_s18 }
  0x83   : > { %s1492_s25 = scalar_lea.vmem (!%p1635_p7), [#allocation2], %s952_s17 }
  0x87   : > { %1215 = dma.done.wait (%p1636_p12), %s258_s24, 896  }
  0x88   : > { %1217 = vsyncadd (%p1636_p12), %s258_s24, 4294966400  ;;  %s266_s30 = sand.u32 1, %s1332_s22   ;;  %s953_s8 = smul.u32 14, %s1486_s18 }
  0x89   : > { %s267_s14 = scalar_lea.sflag [#allocation5], %s266_s30 }
  0x8a   : > { %s1500_s13 = scalar_lea.vmem [#allocation4], %s953_s8 }
  0x8b   : > { %1219 = dma.done.wait (%p1636_p12), %s267_s14, 224  }
  0x8c   : > { %1221 = vsyncadd (%p1636_p12), %s267_s14, 4294967072  ;;  %p1637_p5 = scmp.eq.s32.totalorder %s1332_s22, 0 }
  0x8e   : > { %1223 = dma.done.wait (%p1637_p5), [#allocation5], 1024   ;;  %p1638_p0 = pmov %p1637_p5 }
  0x8f   : > { %v1070_v0 = vld [vmem:[#allocation6] sm:$0xff]   ;;  %v1071_v1 = vld [vmem:[#allocation6 + $0x8] sm:$0xff]   ;;  %v1072_v2 = vld [vmem:[#allocation6 + $0x10] sm:$0xff]   ;;  %vm551_vm0 = vcmask 7168   ;;  %s1544_s9 = scalar_lea.vmem [#allocation7], %s952_s17   ;;  %p1639_p2 = scmp.ne.s32.totalorder %s1630_s29, 0 }
  0x90   : > { %1225 = vsyncadd (%p1638_p0), [#allocation5], 4294966272  ;;  %908 = vmatprep.subr.bf16.mxu0 %v1070_v0  ;;  %932 = vmatprep.subr.bf16.mxu1 %v1070_v0  ;;  %v1073_v3 = vld [vmem:[#allocation6 + $0x18] sm:$0xff]   ;;  %v859_v9 = vld [vmem:[%s1621_s2] ss:$0 sm:$0xff]  ;;  %s566_s10 = smul.u32 (%p1639_p2), 7, %s1332_s22 }
  0x91   : > { %909 = vmatpush3.bf16.msra.mxu0 %v1070_v0  ;;  %940 = vmatpush3.bf16.msra.mxu1 %v1070_v0  ;;  %v321_v4 = vld [vmem:[%s1492_s25] sm:$0xff]  ;;  %v322_v5 = vld [vmem:[%s1492_s25 + $0x8] sm:$0xff]  ;;  %v334_v27 = vld [vmem:[%s1500_s13 + $0xc] sm:$0x3]  ;;  %s883_s11 = smul.u32 (%p1639_p2), 56, %s1332_s22 }
  0x92   : > { %910 = vmatprep.subr.bf16.mxu0 %v1071_v1  ;;  %933 = vmatprep.subr.bf16.mxu1 %v1071_v1  ;;  %v885_v6 = vld [vmem:[%s1500_s13] sm:$0xff]   ;;  %v357_v10 = vsub.f32 %v321_v4, %v859_v9  ;;  %v358_v11 = vsub.f32 %v322_v5, %v859_v9  ;;  %v949_v14 = vld [vmem:[%s1500_s13 + $0x8] sm:$0xf]   ;;  %v341_v36 = vunpack.c.0.s8 %v334_v27  ;;  %s567_s7 = ssub.s32 (%p1639_p2), 25, %s566_s10 }
  0x93   : > { %v886_v7 = vunpack.c.0.s8 %v885_v6  ;;  %v887_v8 = vunpack.c.1.s8 %v885_v6  ;;  %v325_v12 = vld [vmem:[%s1492_s25 + $0x20] sm:$0xff]  ;;  %v326_v13 = vld [vmem:[%s1492_s25 + $0x28] sm:$0xff]  ;;  %v894_v18 = vunpack.c.0.s8 %v949_v14  ;;  %v895_v19 = vunpack.c.1.s8 %v949_v14  ;;  %v323_v31 = vld [vmem:[%s1492_s25 + $0x10] sm:$0xff]  ;;  %p568_p4 = scmp.lt.s32.totalorder (%p1639_p2), %s567_s7, 7  ;;  %s1567_s15 = scalar_lea.vmem (%p1639_p2), %s1624_s5, %s883_s11  }
  0x94   : > { %v1074_v17 = vld [vmem:[#allocation6 + $0x20] sm:$0xff]   ;;  %v361_v20 = vsub.f32 %v325_v12, %v859_v9  ;;  %v362_v21 = vsub.f32 %v326_v13, %v859_v9  ;;  %v1075_v28 = vld [vmem:[#allocation6 + $0x28] sm:$0xff]   ;;  %v890_v33 = vunpack.c.2.s8 %v885_v6  ;;  %v891_v34 = vunpack.c.3.s8 %v885_v6  ;;  %v1076_v38 = vld [vmem:[#allocation6 + $0x30] sm:$0xff]  }
  0x95   : > { %911 = vmatpush3.bf16.msra.mxu0 %v1071_v1  ;;  %941 = vmatpush3.bf16.msra.mxu1 %v1071_v1  ;;  %v1519_v15 = vcvt.s32.f32 %v886_v7  ;;  %v1521_v16 = vcvt.s32.f32 %v887_v8  ;;  %v346_v24 = vcvt.s32.f32 %v894_v18  ;;  %v1527_v25 = vcvt.s32.f32 %v895_v19  ;;  %v324_v32 = vld [vmem:[%s1492_s25 + $0x18] sm:$0xff]  ;;  %v327_v37 = vld [vmem:[%s1492_s25 + $0x30] sm:$0xff]  ;;  %v868_v51 = vld [vmem:[%s1623_s4] ss:$0 sm:$0xff] }
  0x96   : > { %912 = vmatprep.subr.bf16.mxu0 %v1072_v2  ;;  %934 = vmatprep.subr.bf16.mxu1 %v1072_v2  ;;  %v359_v39 = vsub.f32 %v323_v31, %v859_v9  ;;  %v360_v40 = vsub.f32 %v324_v32, %v859_v9  ;;  %v344_v41 = vcvt.s32.f32 %v890_v33  ;;  %v345_v42 = vcvt.s32.f32 %v891_v34  ;;  %v1077_v45 = vld [vmem:[#allocation6 + $0x38] sm:$0xff]  }
  0x97   : > { %v364_v22 = vmul.f32 %v357_v10, %v1519_v15  ;;  %v1525_v23 = vmul.f32 %v358_v11, %v1521_v16  ;;  %v368_v29 = vmul.f32 %v361_v20, %v346_v24  ;;  %v369_v30 = vmul.f32 %v362_v21, %v1527_v25 }
  0x98   : > { %v348_v43 = vcvt.s32.f32 %v341_v36  ;;  %v363_v44 = vsub.f32 %v327_v37, %v859_v9  ;;  %v366_v46 = vmul.f32 %v359_v39, %v344_v41  ;;  %v367_v47 = vmul.f32 %v360_v40, %v345_v42 }
  0x99   : > { %913 = vmatpush3.bf16.msra.mxu0 %v1072_v2  ;;  %942 = vmatpush3.bf16.msra.mxu1 %v1072_v2  ;;  %v371_v26 = vpack.c.bf16 %v1525_v23, %v364_v22  ;;  %v373_v35 = vpack.c.bf16 %v369_v30, %v368_v29  ;;  %v518_v52 = vmul.f32 %v868_v51, %v344_v41 }
  0x9a   : > { %914 = vmatprep.subr.bf16.mxu0 %v1073_v3  ;;  %935 = vmatprep.subr.bf16.mxu1 %v1073_v3  ;;  %v370_v48 = vmul.f32 %v363_v44, %v348_v43  ;;  %v372_v49 = vpack.c.bf16 %v367_v47, %v366_v46  ;;  %v516_v55 = vmul.f32 %v868_v51, %v1519_v15 }
  0x9b   : > { %924 = vmatprep.mubr.bf16.mxu0 %v371_v26  ;;  %928 = vmatprep.mubr.bf16.mxu1 %v373_v35  ;;  %v520_v63 = vmul.f32 %v868_v51, %v346_v24  ;;  %v519_v4 = vmul.f32 %v868_v51, %v345_v42  ;;  %v521_v9 = vmul.f32 %v868_v51, %v1527_v25 }
  0x9c   : > { %v374_v50 = vpack.c.bf16 %v370_v48, %v370_v48  ;;  %v517_v11 = vmul.f32 %v868_v51, %v1521_v16  ;;  %v522_v15 = vmul.f32 %v868_v51, %v348_v43 }
  0x9d   : > { %915 = vmatpush3.bf16.msra.mxu0 %v1073_v3  ;;  %943 = vmatpush3.bf16.msra.mxu1 %v1073_v3 }
  0x9e   : > { %916 = vmatprep.subr.bf16.mxu0 %v1074_v17  ;;  %936 = vmatprep.subr.bf16.mxu1 %v1074_v17 }
  0xa1   : > { %917 = vmatpush3.bf16.msra.mxu0 %v1074_v17  ;;  %944 = vmatpush3.bf16.msra.mxu1 %v1074_v17 }
  0xa2   : > { %918 = vmatprep.subr.bf16.mxu0 %v1075_v28  ;;  %937 = vmatprep.subr.bf16.mxu1 %v1075_v28 }
  0xa5   : > { %919 = vmatpush3.bf16.msra.mxu0 %v1075_v28  ;;  %945 = vmatpush3.bf16.msra.mxu1 %v1075_v28 }
  0xa6   : > { %920 = vmatprep.subr.bf16.mxu0 %v1076_v38  ;;  %938 = vmatprep.subr.bf16.mxu1 %v1076_v38 }
  0xa9   : > { %921 = vmatpush3.bf16.msra.mxu0 %v1076_v38  ;;  %946 = vmatpush3.bf16.msra.mxu1 %v1076_v38 }
  0xaa   : > { %922 = vmatprep.subr.bf16.mxu0 %v1077_v45  ;;  %939 = vmatprep.subr.bf16.mxu1 %v1077_v45 }
  0xad   : > { %923 = vmatpush3.bf16.msra.mxu0 %v1077_v45  ;;  %947 = vmatpush3.bf16.msra.mxu1 %v1077_v45 }
  0xb0   : > { %925 = vmatmul.mubr.bf16.vlgmr.msra.gmra.mrb[0].mxu0 %v372_v49  ;;  %929 = vmatmul.mubr.bf16.vlgmr.msra.gmra.mrb[0].mxu1 %v374_v50 }
 0x183   : > { %v926_v53 = vpop.f32.mrb[0].mxu0  ;;  %v930_v54 = vpop.f32.mrb[0].mxu1 }
 0x184   : > { %v505_v56 = vmul.f32 %v926_v53, %v366_v46  ;;  %v473_v57 = vpop.f32.mrb[1].mxu0  ;;  %v489_v58 = vpop.f32.mrb[1].mxu1  ;;  %v509_v13 = vmul.f32 %v930_v54, %v370_v48 }
 0x185   : > { %v503_v59 = vmul.f32 %v473_v57, %v364_v22  ;;  %v927_v60 = vpop.f32.mrb[2].mxu0  ;;  %v507_v61 = vmul.f32 %v489_v58, %v368_v29  ;;  %v931_v62 = vpop.f32.mrb[2].mxu1 }
 0x186   : > { %v506_v0 = vmul.f32 %v927_v60, %v367_v47  ;;  %v476_v1 = vpop.f32.mrb[3].mxu0  ;;  %v492_v2 = vpop.f32.mrb[3].mxu1  ;;  %v525_v3 = vadd.f32 %v518_v52, %v505_v56  ;;  %v529_v17 = vadd.f32 %v522_v15, %v509_v13 }
 0x187   : > { %v523_v5 = vadd.f32 %v516_v55, %v503_v59  ;;  %v527_v6 = vadd.f32 %v520_v63, %v507_v61  ;;  %v508_v7 = vmul.f32 %v492_v2, %v369_v30  ;;  %v504_v10 = vmul.f32 %v476_v1, %v1525_v23 }
 0x188   : > { %534 = vadd.xlane.f32.xlu1 %v525_v3  ;;  %v526_v8 = vadd.f32 %v519_v4, %v506_v0 }
 0x189   : > { %530 = vadd.xlane.f32.xlu0 %v523_v5  ;;  %v528_v12 = vadd.f32 %v521_v9, %v508_v7  ;;  %v524_v14 = vadd.f32 %v517_v11, %v504_v10 }
 0x18c   : > { %536 = vadd.xlane.f32.xlu1 %v526_v8 }
 0x18d   : > { %538 = vadd.xlane.f32.xlu0 %v527_v6 }
 0x190   : > { %540 = vadd.xlane.f32.xlu1 %v528_v12 }
 0x191   : > { %532 = vadd.xlane.f32.xlu0 %v524_v14 }
 0x195   : > { %542 = vadd.xlane.f32.xlu0 %v529_v17 }
 0x215   : > { %v535_v18 = vpop.xlane.xlu1 %534 }
 0x216   : > { %v546_v19 = vmul.f32 0.5, %v535_v18  ;;  %v531_v20 = vpop.xlane.xlu0 %530 }
 0x217   : > { %v544_v21 = vmul.f32 0.5, %v531_v20 }
 0x218   : > { %554 = vst.msk [vmem:[%s1544_s9 + $0x10] sm:$0xff] %vm551_vm0, %v546_v19 }
 0x219   : > { %552 = vst.msk [vmem:[%s1544_s9] sm:$0xff] %vm551_vm0, %v544_v21  ;;  %v537_v16 = vpop.xlane.xlu1 %536 }
 0x21a   : > { %v547_v22 = vmul.f32 0.5, %v537_v16  ;;  %v539_v23 = vpop.xlane.xlu0 %538 }
 0x21b   : > { %v548_v24 = vmul.f32 0.5, %v539_v23 }
 0x21c   : > { %555 = vst.msk [vmem:[%s1544_s9 + $0x18] sm:$0xff] %vm551_vm0, %v547_v22 }
 0x21d   : > { %556 = vst.msk [vmem:[%s1544_s9 + $0x20] sm:$0xff] %vm551_vm0, %v548_v24  ;;  %v541_v25 = vpop.xlane.xlu1 %540 }
 0x21e   : > { %v549_v26 = vmul.f32 0.5, %v541_v25  ;;  %v533_v27 = vpop.xlane.xlu0 %532 }
 0x21f   : > { %v545_v28 = vmul.f32 0.5, %v533_v27  ;;  %565 = sbr.rel (!%p1639_p2) target bundleno = 611 (0x263), region = 56 }
 0x220   : > { %557 = vst.msk [vmem:[%s1544_s9 + $0x28] sm:$0xff] %vm551_vm0, %v549_v26 }
 0x221   : > { %553 = vst.msk [vmem:[%s1544_s9 + $0x8] sm:$0xff] %vm551_vm0, %v545_v28 }
 0x222   : > { %v543_v29 = vpop.xlane.xlu0 %542 }
 0x223   : > { %v550_v30 = vmul.f32 0.5, %v543_v29 }
 0x225   : > { %558 = vst.msk [vmem:[%s1544_s9 + $0x30] sm:$0xff] %vm551_vm0, %v550_v30 }
 0x226   : > { %s1652_s7 = smov (!%p568_p4, %s567_s7), 7 }
 0x227   : > { %s869_s18 = sshll.u32 %s1652_s7, 7 }
 0x228   : > { %p872_p8 = scmp.eq.s32.totalorder %s869_s18, 0 }
 0x229   : > { %1078 = sdivrem.u32 (!%p872_p8), %s1652_s7, 7 }
 0x22a   : > { %576 = sbr.rel (%p872_p8) target bundleno = 611 (0x263), region = 60 }
 0x232   : > { %s1573_s29 = spop.drf %1078 }
 0x233   : > { %p873_p10 = scmp.le.s32.totalorder %s1573_s29, 0 }
 0x234   : > { %s1640_s22 = smov (!%p873_p10), %s1567_s15  ;;  %s1641_s17 = smov (!%p873_p10), %s1544_s9 }
 0x235   : > { %778 = sbr.rel (%p873_p10) target bundleno = 582 (0x246), region = 151  ;;  %s1582_s24 = smov (!%p873_p10), 0  }
 0x236   : > { %s1584_s25 = smov (!%p873_p10), 0  }
 0x23c LB: >> { %v652_v31 = vld [vmem:[%s1248_s17] sm:$0xff]  ;;  %v654_v32 = vld [vmem:[%s1248_s17 + $0x8] sm:$0xff]  ;;  %v656_v33 = vld [vmem:[%s1248_s17 + $0x10] sm:$0xff]  ;;  %s666_s30 = sadd.s32 1, %s1252_s24  ;;  %s646_s25 = sadd.s32 1, %s1256_s25   ;;  %s1256_s25 = sphi %s1584_s25, %s646_s25   ;;  %s1252_s24 = sphi %s1582_s24, %s1642_s24   ;;  %s1248_s17 = sphi %s1641_s17, %s671_s17   ;;  %s1244_s22 = sphi %s1640_s22, %s672_s22  }
 0x23d   : >> { %653 = vst [vmem:[%s1244_s22] sm:$0xff] %v652_v31  ;;  %655 = vst [vmem:[%s1244_s22 + $0x8] sm:$0xff] %v654_v32  ;;  %v658_v34 = vld [vmem:[%s1248_s17 + $0x18] sm:$0xff]  ;;  %v660_v35 = vld [vmem:[%s1248_s17 + $0x20] sm:$0xff]  ;;  %p667_p13 = scmp.ge.s32.totalorder %s666_s30, %s1573_s29  ;;  %p645_p11 = scmp.ge.s32.totalorder %s646_s25, %s1573_s29 }
 0x23e   : >> { %657 = vst [vmem:[%s1244_s22 + $0x10] sm:$0xff] %v656_v33  ;;  %v662_v36 = vld [vmem:[%s1248_s17 + $0x28] sm:$0xff]  ;;  %659 = vst [vmem:[%s1244_s22 + $0x18] sm:$0xff] %v658_v34  ;;  %v664_v37 = vld [vmem:[%s1248_s17 + $0x30] sm:$0xff] }
 0x23f   : >> { %661 = vst [vmem:[%s1244_s22 + $0x20] sm:$0xff] %v660_v35  ;;  %663 = vst [vmem:[%s1244_s22 + $0x28] sm:$0xff] %v662_v36  ;;  %s1654_s30 = smov (%p667_p13, %s666_s30), 0  ;;  %648 = sbr.rel (!%p645_p11) target bundleno = 572 (0x23c), region = 157 }
 0x240   : >> { %665 = vst [vmem:[%s1244_s22 + $0x30] sm:$0xff] %v664_v37  ;;  %s669_s8 = smul.u32 56, %s1654_s30  ;;  %s1642_s24 = smov %s1654_s30 }
 0x242   : >> { %s671_s17 = scalar_lea.vmem %s1544_s9, %s669_s8 [#allocation7]   ;;  %s672_s22 = scalar_lea.vmem %s1567_s15, %s669_s8  }
 0x246 PF: > { %1080 = sdivrem.u32 %s1652_s7, 7 }
 0x247   : > { %s874_s14 = smul.u32 56, %s1573_s29 }
 0x249   : > { %s677_s13 = scalar_lea.vmem %s1544_s9, %s874_s14 [#allocation7]   ;;  %s679_s28 = scalar_lea.vmem %s1567_s15, %s874_s14  }
 0x24f   : > { %s1081_s16 = spop.drf %1080 }
 0x250   : > { %p876_p1 = scmp.le.s32.totalorder %s1081_s16, 0 }
 0x251   : > { %s1258_s21 = smov (!%p876_p1), %s679_s28   ;;  %s1262_s6 = smov (!%p876_p1), %s677_s13  }
 0x252   : > { %792 = sbr.rel (%p876_p1) target bundleno = 611 (0x263), region = 162  ;;  %s1266_s10 = smov (!%p876_p1), 0  }
 0x253   : > { %s1270_s11 = smov (!%p876_p1), 0  }
 0x259 LB: >> { %v689_v38 = vld [vmem:[%s1264_s6] sm:$0xff]  ;;  %s691_s12 = sadd.s32 1, %s1268_s10  ;;  %s683_s11 = sadd.s32 1, %s1272_s11   ;;  %s1272_s11 = sphi %s1270_s11, %s683_s11   ;;  %s1268_s10 = sphi %s1266_s10, %s1267_s10   ;;  %s1264_s6 = sphi %s1262_s6, %s696_s6   ;;  %s1260_s21 = sphi %s1258_s21, %s697_s21  }
 0x25a   : >> { %690 = vst [vmem:[%s1260_s21] sm:$0xff] %v689_v38  ;;  %p692_p3 = scmp.ge.s32.totalorder %s691_s12, %s1081_s16  ;;  %p682_p6 = scmp.ge.s32.totalorder %s683_s11, %s1081_s16 }
 0x25c   : >> { %s1656_s12 = smov (%p692_p3, %s691_s12), 0  ;;  %685 = sbr.rel (!%p682_p6) target bundleno = 601 (0x259), region = 168 }
 0x25d   : >> { %s877_s9 = sshll.u32 %s1656_s12, 3  ;;  %s1267_s10 = smov %s1656_s12  }
 0x25e   : >> { %s696_s6 = scalar_lea.vmem %s677_s13, %s877_s9 [#allocation7]   ;;  %s697_s21 = scalar_lea.vmem %s679_s28, %s877_s9  }
 0x263 PF: > { %p18_p9 = scmp.ge.s32.totalorder %s1335_s23, 6   ;;  %s1643_s18 = smov %s1232_s19 }
 0x264   : > { %s1644_s19 = smov %s1236_s20  ;;  %s1645_s20 = smov %s1345_s26 }
 0x265   : > { %s1646_s21 = smov %s1335_s23  ;;  %20 = sbr.rel (!%p18_p9) target bundleno = 5 (0x5), region = 179 }
 0x26c   :  { %713 = vsyncpa [#allocation3], 1 }
 0x26d   :  { %715 = vsyncpa [#allocation3 + $0x1], 1 }
 0x26e   :  { %716 = vsyncpa [#allocation5], 1 }
 0x26f   :  { %718 = vsyncpa [#allocation5 + $0x1], 1 }

</bundles_post_ra>
